<compile_context>
chip_gen: v7x
topology: tpu7x:2x2x1
jax: 0.10.0
libtpu: 0.0.40
codegen_flags: <defaults>
</compile_context>

<pallas_src>
import functools
import math
from typing import NamedTuple, Optional

import numpy as np
import jax
import jax.numpy as jnp
from jax.experimental import pallas as pl
from jax.experimental.pallas import tpu as pltpu


# --------------------------------------------------------------------------- utils

def _round_up(x, m):
    return (x + m - 1) // m * m


def _divisor_tile(total, target, *, unit=128, min_tiles=1):
    """Largest multiple-of-`unit` divisor of `total` (itself a multiple of `unit`)
    that is <= `target` and leaves at least `min_tiles` grid steps.

    Using a divisor (instead of padding `total` up to a tile multiple) avoids
    streaming padded zero weights over HBM -- the bound resource of this kernel."""
    q = total // unit
    cap = q // min_tiles if min_tiles > 1 else q
    cap = max(1, min(cap, max(1, target // unit)))
    best = 1
    for d in range(1, q + 1):
        if q % d == 0 and d <= cap:
            best = d
    return best * unit


@functools.lru_cache(maxsize=None)
def _vmem_budget_bytes():
    """~75% of physical VMEM: ~48 MiB on v7x (64 MiB/TC), ~96 MiB on v5e/v6e (128 MiB).
    Leaves headroom for compiler-internal scratch."""
    cap = 64 * 1024 * 1024
    try:
        info = pltpu.get_tpu_info()
        cap = int(getattr(info, "vmem_capacity_bytes", 0) or cap)
    except Exception:
        pass
    return (cap * 3) // 4


# --------------------------------------------------------------------------- kernels

def _dendrite_kernel_bias(ctx_ref, w_ref, b_ref, o_ref, acc_ref):
    # ctx_ref: (B, TK) f32, w_ref: (TK, TN) {f32|bf16}, b_ref: (1, TN) f32,
    # o_ref: (B, TN) f32, acc_ref: (B, TN) f32 scratch (persists across K steps).
    k = pl.program_id(1)

    @pl.when(k == 0)
    def _():
        acc_ref[...] = jnp.zeros_like(acc_ref)

    # Narrow weights are upcast in VMEM (VPU); HBM traffic stays at the narrow width,
    # accumulation stays f32.  MXU has huge slack here (batch rows << 128/256), so the
    # f32 matmul passes are free relative to the weight DMA.
    acc_ref[...] += jnp.dot(ctx_ref[...], w_ref[...].astype(jnp.float32),
                            preferred_element_type=jnp.float32)

    @pl.when(k == pl.num_programs(1) - 1)
    def _():
        o_ref[...] = acc_ref[...] + b_ref[...]      # bias broadcast over batch (VPU)


def _dendrite_kernel_nobias(ctx_ref, w_ref, o_ref, acc_ref):
    k = pl.program_id(1)

    @pl.when(k == 0)
    def _():
        acc_ref[...] = jnp.zeros_like(acc_ref)

    acc_ref[...] += jnp.dot(ctx_ref[...], w_ref[...].astype(jnp.float32),
                            preferred_element_type=jnp.float32)

    @pl.when(k == pl.num_programs(1) - 1)
    def _():
        o_ref[...] = acc_ref[...]


# --------------------------------------------------------------------------- params

class PreparedDendriteSegments(NamedTuple):
    w_dm: jax.Array               # (d_pad, m_pad), weight_dtype, pre-transposed/padded
    b_flat: Optional[jax.Array]   # (1, m_pad) f32, or None
    num_units: int
    num_segments: int
    dim_context: int
    tile_k: int                   # K tile chosen once at prepare time


def prepare_dendrite_segments(weights, biases=None, *, weight_dtype=jnp.bfloat16,
                              max_tile_k=4096):
    """One-time (init / rezero-time) parameter preparation -- NOT part of the forward
    hot path.  weights: (U, S, D) f32 (already masked); biases: (U, S) f32 or None.

    Produces the (D, M) = (dim_context, num_units*num_segments) layout the kernel
    consumes directly, padded only where layout demands it, cast to the streaming
    dtype (bf16 by default; pass jnp.float32 for exact module semantics)."""
    U, S, D = weights.shape
    M = U * S
    m_pad = _round_up(M, 128)

    # Decide K tiling once.  Small/typical D: keep full D per tile (no D padding, no
    # wasted weight bandwidth).  Very large D: tile K so weight tiles stay in the
    # multi-MiB sweet spot on every generation's VMEM budget.
    if D <= max_tile_k:
        tile_k, d_pad = D, D
    else:
        d_pad = _round_up(D, 128)
        tile_k = _divisor_tile(d_pad, max_tile_k)

    w_dm = jnp.asarray(weights, jnp.float32).transpose(2, 0, 1).reshape(D, M)
    if (d_pad, m_pad) != (D, M):
        w_dm = jnp.pad(w_dm, ((0, d_pad - D), (0, m_pad - M)))
    w_dm = w_dm.astype(weight_dtype)

    b_flat = None
    if biases is not None:
        b_flat = jnp.asarray(biases, jnp.float32).reshape(1, M)
        if m_pad != M:
            b_flat = jnp.pad(b_flat, ((0, 0), (0, m_pad - M)))

    return PreparedDendriteSegments(w_dm=w_dm, b_flat=b_flat, num_units=U,
                                    num_segments=S, dim_context=D, tile_k=tile_k)


# --------------------------------------------------------------------------- forward

@functools.partial(jax.jit,
                   static_argnames=("num_units", "num_segments", "tile_k",
                                    "target_tile_bytes"))
def _dendrite_forward_pallas(context, w_dm, b_flat, *, num_units, num_segments,
                             tile_k, target_tile_bytes):
    B, D = context.shape
    d_pad, m_pad = w_dm.shape
    M = num_units * num_segments
    w_itemsize = jnp.dtype(w_dm.dtype).itemsize

    if d_pad != D:
        # Only in the K-tiled (very large dim_context) configuration; tiny cost.
        context = jnp.pad(context, ((0, 0), (0, d_pad - D)))

    k_tiles = d_pad // tile_k
    budget = _vmem_budget_bytes()

    # Multi-MiB weight tiles amortize the ~0.35 us per-grid-step overhead; cap so
    # double-buffered weights + context + output + bias + accumulator fit the budget.
    tgt = max(1 << 20, min(target_tile_bytes, budget // 6))
    per_col = 2 * tile_k * w_itemsize + 3 * B * 4 + 2 * 4
    col_budget = budget // 2 - 2 * B * tile_k * 4
    max_tile_n = max(128, col_budget // per_col)
    target_tile_n = max(128, min(tgt // (tile_k * w_itemsize), max_tile_n))
    min_m_tiles = 2 if m_pad >= 256 else 1          # keep both v7x TensorCores busy
    tile_n = _divisor_tile(m_pad, target_tile_n, min_tiles=min_m_tiles)
    m_tiles = m_pad // tile_n

    needed = (2 * tile_k * tile_n * w_itemsize      # double-buffered weight tiles
              + 2 * B * tile_k * 4                  # context tiles
              + 2 * B * tile_n * 4                  # output tiles
              + (2 * tile_n * 4 if b_flat is not None else 0)
              + B * tile_n * 4)                     # f32 accumulator scratch
    vmem_limit = int(min(budget, max(2 * needed, 16 << 20)))

    ctx_reads = m_tiles if k_tiles > 1 else 1
    cost = pl.CostEstimate(
        flops=2 * B * m_pad * d_pad,
        transcendentals=0,
        bytes_accessed=(B * d_pad * 4 * ctx_reads) + (d_pad * m_pad * w_itemsize)
        + (m_pad * 4 if b_flat is not None else 0) + (B * m_pad * 4),
    )
    compiler_params = pltpu.CompilerParams(
        dimension_semantics=("parallel", "arbitrary"),
        vmem_limit_bytes=vmem_limit,
    )

    ctx_spec = pl.BlockSpec((B, tile_k), lambda j, k: (0, k))
    # TODO(synk): if xprof still shows exposed weight DMA at these tile sizes, add
    # pipeline_mode=pl.Buffered(3) to w_spec only (weights are the only streamed operand).
    w_spec = pl.BlockSpec((tile_k, tile_n), lambda j, k: (k, j))
    out_spec = pl.BlockSpec((B, tile_n), lambda j, k: (0, j))
    out_shape = jax.ShapeDtypeStruct((B, m_pad), jnp.float32)
    scratch = [pltpu.VMEM((B, tile_n), jnp.float32)]
    grid = (m_tiles, k_tiles)

    if b_flat is None:
        out_flat = pl.pallas_call(
            _dendrite_kernel_nobias,
            out_shape=out_shape, grid=grid,
            in_specs=[ctx_spec, w_spec], out_specs=out_spec,
            scratch_shapes=scratch,
            compiler_params=compiler_params, cost_estimate=cost,
        )(context, w_dm)
    else:
        b_spec = pl.BlockSpec((1, tile_n), lambda j, k: (0, j))
        out_flat = pl.pallas_call(
            _dendrite_kernel_bias,
            out_shape=out_shape, grid=grid,
            in_specs=[ctx_spec, w_spec, b_spec], out_specs=out_spec,
            scratch_shapes=scratch,
            compiler_params=compiler_params, cost_estimate=cost,
        )(context, w_dm, b_flat)

    return out_flat[:, :M].reshape(B, num_units, num_segments)


@functools.partial(jax.jit, static_argnames=("num_units", "num_segments"))
def _dendrite_forward_xla(context, w_dm, b_flat, *, num_units, num_segments):
    """Plain fused XLA path for tiny problems where pallas_call launch overhead wins."""
    B, D = context.shape
    d_pad, _ = w_dm.shape
    if d_pad != D:
        context = jnp.pad(context, ((0, 0), (0, d_pad - D)))
    out = jnp.dot(context, w_dm.astype(jnp.float32),
                  precision=jax.lax.Precision.HIGHEST)
    if b_flat is not None:
        out = out + b_flat
    M = num_units * num_segments
    return out[:, :M].reshape(B, num_units, num_segments)


def dendrite_segments_forward(context, prepared, *, use_pallas=None,
                              target_tile_bytes=8 << 20):
    """Forward pass: context (B, dim_context) f32 -> (B, num_units, num_segments) f32."""
    w_bytes = prepared.w_dm.size * jnp.dtype(prepared.w_dm.dtype).itemsize
    if use_pallas is None:
        # Sub-MiB weights: launch + pad/slice epilogue dominates; use fused XLA.
        use_pallas = w_bytes >= (1 << 20)
    if use_pallas:
        return _dendrite_forward_pallas(
            context, prepared.w_dm, prepared.b_flat,
            num_units=prepared.num_units, num_segments=prepared.num_segments,
            tile_k=prepared.tile_k, target_tile_bytes=target_tile_bytes)
    return _dendrite_forward_xla(
        context, prepared.w_dm, prepared.b_flat,
        num_units=prepared.num_units, num_segments=prepared.num_segments)


# --------------------------------------------------------------------------- init glue

def _init_dendrite_segments(key, num_units, num_segments, dim_context, sparsity,
                            bias=True):
    """JAX re-implementation of DendriteSegments.__init__ parameter setup:
      - per-unit kaiming_uniform_(a=sqrt(5)) on (num_segments, dim_context)
        => uniform(-1/sqrt(dim_context), 1/sqrt(dim_context))
      - bias uniform(-1/sqrt(fan_in), 1/sqrt(fan_in)), fan_in = dim_context
      - random off-mask with exact per-(unit,segment)-row sparsity; masked weights = 0
    """
    k_w, k_b, k_m = jax.random.split(key, 3)
    bound = 1.0 / math.sqrt(dim_context)

    weights = jax.random.uniform(
        k_w, (num_units, num_segments, dim_context),
        minval=-bound, maxval=bound, dtype=jnp.float32)
    biases = None
    if bias:
        biases = jax.random.uniform(
            k_b, (num_units, num_segments),
            minval=-bound, maxval=bound, dtype=jnp.float32)

    num_nz = int(round((1.0 - sparsity) * dim_context))
    scores = jax.random.uniform(k_m, (num_units, num_segments, dim_context))
    ranks = jnp.argsort(jnp.argsort(scores, axis=-1), axis=-1)
    on_mask = ranks < num_nz
    weights = jnp.where(on_mask, weights, 0.0)     # rezero_weights
    return weights, biases


# --------------------------------------------------------------------------- test

if __name__ == "__main__":
    batch, num_units, num_segments, dim_context, sparsity = 8, 32, 8, 128, 0.5

    key = jax.random.PRNGKey(0)
    k_init, k_ctx, k_init2, k_ctx2 = jax.random.split(key, 4)

    weights, biases = _init_dendrite_segments(
        k_init, num_units, num_segments, dim_context, sparsity, bias=True)
    context = jax.random.normal(k_ctx, (batch, dim_context), dtype=jnp.float32)

    hi = jax.lax.Precision.HIGHEST

    # 1) f32-weight Pallas path with bias (exact original module semantics).
    prep_f32 = prepare_dendrite_segments(weights, biases, weight_dtype=jnp.float32)
    out = jax.block_until_ready(
        dendrite_segments_forward(context, prep_f32, use_pallas=True))
    ref = jnp.einsum('ijk,bk->bij', weights, context, precision=hi) + biases
    assert out.shape == (batch, num_units, num_segments)
    np.testing.assert_allclose(np.asarray(out), np.asarray(ref), rtol=1e-5, atol=1e-5)

    # 2) bf16-streamed weights (recommended deployment config), no bias.
    prep_bf16 = prepare_dendrite_segments(weights, None, weight_dtype=jnp.bfloat16)
    out_bf16 = jax.block_until_ready(
        dendrite_segments_forward(context, prep_bf16, use_pallas=True))
    ref_bf16 = jnp.einsum('ijk,bk->bij',
                          weights.astype(jnp.bfloat16).astype(jnp.float32),
                          context, precision=hi)
    np.testing.assert_allclose(np.asarray(out_bf16), np.asarray(ref_bf16),
                               rtol=1e-4, atol=1e-4)

    # 3) K-tiled accumulator path (large-dim_context configuration), bias, f32 weights.
    d2 = 256
    weights2, biases2 = _init_dendrite_segments(
        k_init2, num_units, num_segments, d2, sparsity, bias=True)
    context2 = jax.random.normal(k_ctx2, (batch, d2), dtype=jnp.float32)
    prep_k = prepare_dendrite_segments(weights2, biases2, weight_dtype=jnp.float32,
                                       max_tile_k=128)   # force 2 K tiles
    out_k = jax.block_until_ready(
        dendrite_segments_forward(context2, prep_k, use_pallas=True))
    ref_k = jnp.einsum('ijk,bk->bij', weights2, context2, precision=hi) + biases2
    np.testing.assert_allclose(np.asarray(out_k), np.asarray(ref_k),
                               rtol=1e-5, atol=1e-5)

    # 4) Auto-dispatch at this tiny size uses the fused-XLA fallback; same result.
    out_auto = jax.block_until_ready(dendrite_segments_forward(context, prep_f32))
    np.testing.assert_allclose(np.asarray(out_auto), np.asarray(ref),
                               rtol=1e-5, atol=1e-5)

    print("KERNEL_OK")
</pallas_src>

<mosaic_0001>
module attributes {stable_mosaic.version = 11 : i64} {
  func.func @_dendrite_kernel_bias(%arg0: i32, %arg1: i32, %arg2: memref<8x128xf32, #tpu.memory_space<vmem>>, %arg3: memref<128x128xf32, #tpu.memory_space<vmem>>, %arg4: memref<1x128xf32, #tpu.memory_space<vmem>>, %arg5: memref<8x128xf32, #tpu.memory_space<vmem>>, %arg6: memref<8x128xf32, #tpu.memory_space<vmem>>) attributes {dimension_semantics = [#tpu.dimension_semantics<parallel>, #tpu.dimension_semantics<arbitrary>], iteration_bounds = array<i64: 2, 1>, scalar_prefetch = 0 : i64, scratch_operands = 1 : i64, tpu.core_type = #tpu.core_type<tc>, window_params = [{transform_indices = @transform_0, window_bounds = array<i64: 8, 128>}, {transform_indices = @transform_1, window_bounds = array<i64: 128, 128>}, {transform_indices = @transform_2, window_bounds = array<i64: 1, 128>}, {transform_indices = @transform_3, window_bounds = array<i64: 8, 128>}]} {
    %c0_i32 = arith.constant 0 : i32
    %0 = arith.cmpi eq, %arg1, %c0_i32 : i32
    %1 = arith.extui %0 : i1 to i32
    %c0_i32_0 = arith.constant 0 : i32
    %2 = arith.cmpi ne, %1, %c0_i32_0 : i32
    scf.if %2 {
      %cst_10 = arith.constant 0.000000e+00 : f32
      %12 = vector.broadcast %cst_10 : f32 to vector<8x128xf32>
      %c0_11 = arith.constant 0 : index
      %c0_12 = arith.constant 0 : index
      %13 = vector.load %arg6[%c0_11, %c0_12] : memref<8x128xf32, #tpu.memory_space<vmem>>, vector<8x128xf32>
      tpu.vector_store %arg6[%c0_11, %c0_12], %12 {strides = array<i32>} : memref<8x128xf32, #tpu.memory_space<vmem>>, vector<8x128xf32>,
    } else {
    }
    %c0 = arith.constant 0 : index
    %c0_1 = arith.constant 0 : index
    %3 = vector.load %arg6[%c0, %c0_1] : memref<8x128xf32, #tpu.memory_space<vmem>>, vector<8x128xf32>
    %c0_2 = arith.constant 0 : index
    %c0_3 = arith.constant 0 : index
    %4 = vector.load %arg2[%c0_2, %c0_3] : memref<8x128xf32, #tpu.memory_space<vmem>>, vector<8x128xf32>
    %c0_4 = arith.constant 0 : index
    %c0_5 = arith.constant 0 : index
    %5 = vector.load %arg3[%c0_4, %c0_5] : memref<128x128xf32, #tpu.memory_space<vmem>>, vector<128x128xf32>
    %cst = arith.constant dense<0.000000e+00> : vector<8x128xf32>
    %6 = tpu.matmul %4, %5, %cst {dimension_numbers = #tpu.dot_dimension_numbers<[1], [0], [0], [1], [0, 0, 1, 1], [], []>} : vector<8x128xf32>, vector<128x128xf32>, vector<8x128xf32> -> vector<8x128xf32>
    %7 = arith.addf %3, %6 : vector<8x128xf32>
    %c0_6 = arith.constant 0 : index
    %c0_7 = arith.constant 0 : index
    %8 = vector.load %arg6[%c0_6, %c0_7] : memref<8x128xf32, #tpu.memory_space<vmem>>, vector<8x128xf32>
    tpu.vector_store %arg6[%c0_6, %c0_7], %7 {strides = array<i32>} : memref<8x128xf32, #tpu.memory_space<vmem>>, vector<8x128xf32>,
    %c0_i32_8 = arith.constant 0 : i32
    %9 = arith.cmpi eq, %arg1, %c0_i32_8 : i32
    %10 = arith.extui %9 : i1 to i32
    %c0_i32_9 = arith.constant 0 : i32
    %11 = arith.cmpi ne, %10, %c0_i32_9 : i32
    scf.if %11 {
      %c0_10 = arith.constant 0 : index
      %c0_11 = arith.constant 0 : index
      %12 = vector.load %arg6[%c0_10, %c0_11] : memref<8x128xf32, #tpu.memory_space<vmem>>, vector<8x128xf32>
      %c0_12 = arith.constant 0 : index
      %c0_13 = arith.constant 0 : index
      %13 = vector.load %arg4[%c0_12, %c0_13] : memref<1x128xf32, #tpu.memory_space<vmem>>, vector<1x128xf32>
      %14 = vector.broadcast %13 : vector<1x128xf32> to vector<8x128xf32>
      %15 = arith.addf %12, %14 : vector<8x128xf32>
      %c0_14 = arith.constant 0 : index
      %c0_15 = arith.constant 0 : index
      %16 = vector.load %arg5[%c0_14, %c0_15] : memref<8x128xf32, #tpu.memory_space<vmem>>, vector<8x128xf32>
      tpu.vector_store %arg5[%c0_14, %c0_15], %15 {strides = array<i32>} : memref<8x128xf32, #tpu.memory_space<vmem>>, vector<8x128xf32>,
    } else {
    }
    return
  }
  func.func @transform_0(%arg0: i32, %arg1: i32) -> (i32, i32) {
    %c0_i32 = arith.constant 0 : i32
    %c0_i32_0 = arith.constant 0 : i32
    return %c0_i32, %arg1 : i32, i32
  }
  func.func @transform_1(%arg0: i32, %arg1: i32) -> (i32, i32) {
    %c0_i32 = arith.constant 0 : i32
    return %arg1, %arg0 : i32, i32
  }
  func.func @transform_2(%arg0: i32, %arg1: i32) -> (i32, i32) {
    %c0_i32 = arith.constant 0 : i32
    %c0_i32_0 = arith.constant 0 : i32
    return %c0_i32, %arg0 : i32, i32
  }
  func.func @transform_3(%arg0: i32, %arg1: i32) -> (i32, i32) {
    %c0_i32 = arith.constant 0 : i32
    %c0_i32_0 = arith.constant 0 : i32
    return %c0_i32, %arg0 : i32, i32
  }
}

</mosaic_0001>

<bundles_post_ra>
// kernel: _dendrite_forward_pallas.1
= control target key start
LH: loop header
LB: loop body
LE: loop exit
PB: predicated region body
PF: predicated region fallthrough
CT: control target
= control target key end

     0   :  { %8 = vsyncpa [#allocation4], 0  ;;  %s935_s0 = inlined_call_operand.hbm [shape: f32[8,128], index: 0, kind: input, shape index: {}]   ;;  %s936_s1 = inlined_call_operand.hbm [shape: f32[128,256], index: 1, kind: input, shape index: {}]   ;;  %s937_s2 = inlined_call_operand.vmem [shape: f32[1,256], index: 2, kind: input, shape index: {}]   ;;  %s938_s3 = inlined_call_operand.vmem [shape: f32[8,256], index: 3, kind: output, shape index: {}]  }
   0x1   :  { %9 = vsyncpa [#allocation6], 0 }
   0x2   :  { %11 = vsyncpa [#allocation6 + $0x1], 0  ;;  %s750_s12 = smov 0   ;;  %s752_s13 = smov 0  }
   0x3   :  { %s754_s14 = smov 0   ;;  %s756_s15 = smov 0  }
   0x4   :  { %s758_s16 = smov 0   ;;  %s760_s17 = smov 0  }
   0x5 LB: > { %s446_s18 = sadd.s32 4294967295, %s720_s17   ;;  %s64_s19 = sadd.s32 1, %s708_s14  ;;  %s720_s17 = sphi %s760_s17, %s17_s17   ;;  %s716_s16 = sphi %s758_s16, %s957_s16   ;;  %s712_s15 = sphi %s756_s15, %s956_s15   ;;  %s708_s14 = sphi %s754_s14, %s955_s14   ;;  %s704_s13 = sphi %s752_s13, %s954_s13   ;;  %s700_s12 = sphi %s750_s12, %s953_s12  }
   0x6   : > { %p71_p0 = scmp.ne.s32.totalorder %s708_s14, %s704_s13  ;;  %p72_p1 = scmp.eq.s32.totalorder %s720_s17, 0 }
   0x7   : > { %p77_p2 = scmp.ne.s32.totalorder %s704_s13, %s700_s12  ;;  %p784_p3 = scmp.eq.s32.totalorder %s446_s18, 0 }
   0x8   : > { %p73_p4 = por %p72_p1, %p71_p0  ;;  %p448_p5 = scmp.ge.s32.totalorder %s720_s17, 1 }
   0x9   : > { %s944_s20 = scalar_select %p784_p3, 1, 0 }
   0xa   : > { %p791_p6 = por %p784_p3, %p77_p2  ;;  %p140_p7 = scmp.lt.s32.totalorder %s720_s17, 3 }
   0xb   : > { %s722_s23 = smov [#allocation3]   ;;  %p551_p10 = scmp.lt.s32.totalorder %s720_s17, 2 }
   0xc   : > { %s945_s21 = scalar_select %p791_p6, 1, 0 }
   0xd   : > { %p796_p8 = pnand %p448_p5, %p140_p7  ;;  %s155_s24 = sshll.u32 %s722_s23, 4  ;;  %s156_s24 = int_to_ptr.vmem [resolvable:$true] %s155_s24 }
   0xe   : > { %s166_s25 = sand.u32 1, %s708_s14   ;;  %p810_p12 = pnand %p551_p10, %p73_p4 }
   0xf   : > { %s946_s22 = scalar_select %p796_p8, 1, 0 }
  0x10   : > { %p542_p9 = pneg %p796_p8  ;;  %s608_s30 = scalar_lea.hbm %s935_s0, 128 }
  0x11   : > { %s948_s27 = scalar_select %p810_p12, 1, 0 }
  0x12   : > { %p806_p11 = pnand %p542_p9, %p784_p3  ;;  %p609_p13 = scmp.ne.s32.totalorder %s935_s0, %s608_s30 }
  0x13   : > { %p615_p5 = scmp.lt.u32.totalorder %s608_s30, %s935_s0 }
  0x14   : > { %p610_p0 = pneg %p806_p11 }
  0x16   : > { %p611_p1 = pnand %p610_p0, %p609_p13 }
  0x18   : > { %p612_p2 = pneg %p611_p1 }
  0x1a   : > { %p617_p4 = pnand %p615_p5, %p612_p2 }
  0x1c   : > { %620 = shalt.err (!%p617_p4)
}
  0x1d   : > { %s621_s8 = scalar_lea.vmem %s156_s24, 128  ;;  %p629_p6 = scmp.lt.s32.totalorder %s156_s24, %s156_s24 }
  0x1e   : > { %p622_p7 = scmp.ne.s32.totalorder %s156_s24, %s621_s8  ;;  %p630_p3 = scmp.lt.s32.totalorder %s621_s8, %s621_s8 }
  0x20   : > { %p624_p9 = pnand %p622_p7, %p610_p0  ;;  %p631_p8 = por %p630_p3, %p629_p6 }
  0x22   : > { %p625_p10 = pneg %p624_p9 }
  0x24   : > { %p632_p12 = pnand %p631_p8, %p625_p10 }
  0x26   : > { %635 = shalt.err (!%p632_p12)
}
  0x27   : > { %545 = dma.hbm_to_vmem [thread:$0]  (!%p806_p11), %s935_s0, 128, %s156_s24, [#allocation4]  }
  0x28   : > { %s29_s11 = sadd.s32 1, %s716_s16  ;;  %s451_s12 = sshll.u32 %s166_s25, 7 }
  0x29   : > { %p31_p3 = scmp.ge.s32.totalorder %s29_s11, 2  ;;  %s452_s18 = sshll.u32 %s716_s16, 7 }
  0x2a   : > { %s170_s23 = scalar_lea.vmem [#allocation5], %s451_s12  ;;  %s839_s30 = scalar_lea.hbm %s936_s1, %s452_s18 }
  0x2b   : > { %s179_s26 = sshll.u32 %s170_s23, 4  ;;  %s959_s11 = smov (%p31_p3, %s29_s11), 0  ;;  %s841_s26 = int_to_ptr.vmem [resolvable:$true] %s179_s26 }
  0x2c   : > { %s60_s24 = ssub.s32 %s716_s16, %s959_s11  ;;  %s852_s5 = scalar_lea.sflag [#allocation6], %s166_s25 }
  0x2d   : > { %p62_p6 = scmp.eq.s32.totalorder %s60_s24, 0  ;;  %s636_s6 = scalar_lea.hbm %s839_s30, 2048 }
  0x2e   : > { %p637_p8 = scmp.ne.s32.totalorder %s839_s30, %s636_s6  ;;  %p949_p11 = scmp.ne.s32.totalorder %s948_s27, 0 }
  0x2f   : > { %s848_s4 = scalar_select %p62_p6, %s708_s14, %s64_s19  }
  0x30   : > { %p638_p12 = pneg %p949_p11  ;;  %s641_s9 = scalar_lea.hbm %s936_s1, 4096 }
  0x31   : > { %p642_p1 = scmp.lt.u32.totalorder %s839_s30, %s936_s1  ;;  %p643_p2 = scmp.lt.u32.totalorder %s641_s9, %s636_s6 }
  0x32   : > { %p639_p13 = pnand %p638_p12, %p637_p8  ;;  %p645_p4 = scmp.lt.u32.totalorder %s636_s6, %s839_s30 }
  0x33   : > { %p644_p5 = por %p643_p2, %p642_p1 }
  0x34   : > { %p640_p0 = pneg %p639_p13 }
  0x35   : > { %p646_p7 = por %p645_p4, %p644_p5 }
  0x37   : > { %p647_p9 = pnand %p646_p7, %p640_p0 }
  0x39   : > { %650 = shalt.err (!%p647_p9)
}
  0x3a   : > { %s651_s19 = scalar_lea.vmem %s841_s26, 2048  ;;  %s723_s25 = smov [#allocation5]  }
  0x3b   : > { %p652_p10 = scmp.ne.s32.totalorder %s841_s26, %s651_s19  ;;  %s656_s18 = sshll.u32 %s723_s25, 4  ;;  %s657_s18 = int_to_ptr.vmem [resolvable:$false] %s656_s18 }
  0x3c   : > { %s658_s23 = scalar_lea.vmem %s657_s18, 4096  ;;  %p659_p8 = scmp.lt.s32.totalorder %s841_s26, %s657_s18 }
  0x3d   : > { %p654_p3 = pnand %p652_p10, %p638_p12  ;;  %p660_p13 = scmp.lt.s32.totalorder %s658_s23, %s651_s19 }
  0x3f   : > { %p655_p6 = pneg %p654_p3  ;;  %p661_p1 = por %p660_p13, %p659_p8 }
  0x41   : > { %p662_p2 = pnand %p661_p1, %p655_p6 }
  0x43   : > { %665 = shalt.err (!%p662_p2)
}
  0x44   : > { %s724_s28 = smov 256   ;;  %s725_s29 = smov 128  }
  0x45   : > { %s726_s24 = smov 8   ;;  %p950_p12 = scmp.ne.s32.totalorder %s946_s22, 0 }
  0x46   : > { %549 = dma.hbm_to_vmem [thread:$0]  (!%p949_p11), %s839_s30, 2048, %s841_s26, %s852_s5, %s724_s28, %s725_s29, %s726_s24  }
  0x47   : > { %197 = sbr.rel (%p950_p12) target bundleno = 332 (0x14c), region = 32  ;;  %p951_p0 = scmp.ne.s32.totalorder (!%p950_p12), %s944_s20, 0 }
  0x4e   : > { %691 = dma.done.wait (%p951_p0), [#allocation4], 128  }
  0x4f   : > { %693 = vsyncadd (%p951_p0), [#allocation4], 4294967168  ;;  %s203_s6 = sand.u32 1, %s704_s13   ;;  %p952_p5 = scmp.ne.s32.totalorder %s945_s21, 0 }
  0x50   : > { %s455_s7 = sshll.u32 %s203_s6, 7  ;;  %s204_s8 = scalar_lea.sflag [#allocation6], %s203_s6 }
  0x51   : > { %s887_s9 = scalar_lea.vmem [#allocation5], %s455_s7 }
  0x52   : > { %695 = dma.done.wait (%p952_p5), %s204_s8, 2048  }
  0x53   : > { %697 = vsyncadd (%p952_p5), %s204_s8, 4294965248  ;;  %v727_v0 = vmov 0.0|0.0   ;;  %vm728_vm0 = vmmov 0   ;;  %v729_v1 = vmov 0.0   ;;  %v247_v2 = vld [vmem:[%s887_s9] sm:$0xff]  ;;  %v248_v3 = vld [vmem:[%s887_s9 + $0x8] sm:$0xff] }
  0x54   : > { %512 = vmatprep.subr.bf16.mxu0 %v727_v0  ;;  %509 = vmatprep.mubr.msk.f32.mxu0 %vm728_vm0, %v729_v1  ;;  %v249_v4 = vld [vmem:[%s887_s9 + $0x10] sm:$0xff]  ;;  %v513_v5 = vpack.c.bf16 %v248_v3, %v247_v2  ;;  %v250_v6 = vld [vmem:[%s887_s9 + $0x18] sm:$0xff]  ;;  %v251_v8 = vld [vmem:[%s887_s9 + $0x20] sm:$0xff]  ;;  %p233_p11 = scmp.lt.s32.totalorder %s712_s15, 1 }
  0x55   : > { %v516_v7 = vpack.c.bf16 %v250_v6, %v249_v4  ;;  %v252_v9 = vld [vmem:[%s887_s9 + $0x28] sm:$0xff]  ;;  %v253_v11 = vld [vmem:[%s887_s9 + $0x30] sm:$0xff]  ;;  %v254_v12 = vld [vmem:[%s887_s9 + $0x38] sm:$0xff] }
  0x56   : > { %514 = vmatpush3.bf16.msra.mxu0 %v513_v5  ;;  %v519_v10 = vpack.c.bf16 %v252_v9, %v251_v8  ;;  %v522_v13 = vpack.c.bf16 %v254_v12, %v253_v11  ;;  %v255_v14 = vld [vmem:[%s887_s9 + $0x40] sm:$0xff]  ;;  %v256_v15 = vld [vmem:[%s887_s9 + $0x48] sm:$0xff]  ;;  %v257_v17 = vld [vmem:[%s887_s9 + $0x50] sm:$0xff]  ;;  %s961_s15 = smov (!%p233_p11, %s712_s15), 1 }
  0x57   : > { %515 = vmatprep.subr.bf16.mxu0 %v727_v0  ;;  %v525_v16 = vpack.c.bf16 %v256_v15, %v255_v14  ;;  %v258_v18 = vld [vmem:[%s887_s9 + $0x58] sm:$0xff]  ;;  %v259_v20 = vld [vmem:[%s887_s9 + $0x60] sm:$0xff]  ;;  %v260_v21 = vld [vmem:[%s887_s9 + $0x68] sm:$0xff]  ;;  %s235_s22 = scalar_lea.vmem %s937_s2, %s961_s15  ;;  %s456_s27 = sshll.u32 %s961_s15, 3 }
  0x58   : > { %v528_v19 = vpack.c.bf16 %v258_v18, %v257_v17  ;;  %v531_v22 = vpack.c.bf16 %v260_v21, %v259_v20  ;;  %v261_v23 = vld [vmem:[%s887_s9 + $0x70] sm:$0xff]  ;;  %v262_v24 = vld [vmem:[%s887_s9 + $0x78] sm:$0xff]  ;;  %s239_s5 = scalar_lea.vmem %s938_s3, %s456_s27 }
  0x59   : > { %v534_v25 = vpack.c.bf16 %v262_v24, %v261_v23  ;;  %v246_v26 = vld [vmem:[#allocation3] sm:$0xff] }
  0x5a   : > { %517 = vmatpush3.bf16.msra.mxu0 %v516_v7  ;;  %v457_v27 = vld [vmem:[%s235_s22] ss:$0 sm:$0xff] }
  0x5b   : > { %518 = vmatprep.subr.bf16.mxu0 %v727_v0 }
  0x5e   : > { %520 = vmatpush3.bf16.msra.mxu0 %v519_v10 }
  0x5f   : > { %521 = vmatprep.subr.bf16.mxu0 %v727_v0 }
  0x62   : > { %523 = vmatpush3.bf16.msra.mxu0 %v522_v13 }
  0x63   : > { %524 = vmatprep.subr.bf16.mxu0 %v727_v0 }
  0x66   : > { %526 = vmatpush3.bf16.msra.mxu0 %v525_v16 }
  0x67   : > { %527 = vmatprep.subr.bf16.mxu0 %v727_v0 }
  0x6a   : > { %529 = vmatpush3.bf16.msra.mxu0 %v528_v19 }
  0x6b   : > { %530 = vmatprep.subr.bf16.mxu0 %v727_v0 }
  0x6e   : > { %532 = vmatpush3.bf16.msra.mxu0 %v531_v22 }
  0x6f   : > { %533 = vmatprep.subr.bf16.mxu0 %v727_v0 }
  0x72   : > { %535 = vmatpush3.bf16.msra.mxu0 %v534_v25 }
  0x75   : > { %510 = vmatmul.mubr.f32.vlgmr.msra.gmra.mrb[0].mxu0 %v246_v26 }
 0x148   : > { %v329_v28 = vpop.f32.mrb[0].mxu0 }
 0x149   : > { %v346_v29 = vadd.f32 %v457_v27, %v329_v28  ;;  %v511_v30 = vpop.f32.mrb[1].mxu0 }
 0x14b   : > { %347 = vst [vmem:[%s239_s5] sm:$0xff] %v346_v29 }
 0x14c PF: > { %s17_s17 = sadd.s32 1, %s720_s17   ;;  %s953_s12 = smov %s704_s13 }
 0x14d   : > { %p14_p4 = scmp.ge.s32.totalorder %s17_s17, 4   ;;  %s954_s13 = smov %s708_s14 }
 0x14e   : > { %s955_s14 = smov %s848_s4  ;;  %s956_s15 = smov %s716_s16 }
 0x14f   : > { %s957_s16 = smov %s959_s11  ;;  %16 = sbr.rel (!%p14_p4) target bundleno = 5 (0x5), region = 89 }
 0x156   :  { %367 = vsyncpa [#allocation4], 1 }
 0x157   :  { %369 = vsyncpa [#allocation4 + $0x1], 1 }
 0x158   :  { %370 = vsyncpa [#allocation6], 1 }
 0x159   :  { %372 = vsyncpa [#allocation6 + $0x1], 1 }

</bundles_post_ra>
